<compile_context>
chip_gen: v5e
topology: v5e:2x2
jax: 0.10.0
libtpu: 0.0.40
codegen_flags: <defaults>
</compile_context>

<pallas_src>
import jax
import jax.numpy as jnp
from jax import lax
from jax.experimental import pallas as pl
from jax.experimental.pallas import tpu as pltpu


def _round_up(x, m):
    return (x + m - 1) // m * m


def _pick_tile(dim, want, mult):
    """Largest multiple-of-`mult` tile <= `want` that divides the
    `mult`-aligned `dim` (so no padding and no trailing slice is needed).
    Falls back to `want` (padding path) if no divisor exists in
    [want/2, want]."""
    dim_a = _round_up(dim, mult)
    want = max(mult, (min(want, dim_a) // mult) * mult)
    lo = max(mult, want // 2)
    t = want
    while t >= lo:
        if dim_a % t == 0:
            return t
        t -= mult
    return want


# ----------------------------------------------------------------------------
# Kernels: one (tm, tn) output tile; grid = (m, n, k), k innermost reduction.
# f32 VMEM accumulator, zero-init at k==0, writeback (cast) at k==last.
# ----------------------------------------------------------------------------
def _lm_head_kernel(x_ref, w_ref, o_ref, acc_ref):
    k = pl.program_id(2)

    @pl.when(k == 0)
    def _():
        acc_ref[...] = jnp.zeros_like(acc_ref)

    # x[tm, tk] . w[tn, tk]^T -> [tm, tn]; weight stays [N, K] (no HBM
    # transpose), f32 accumulation on the MXU.
    acc_ref[...] += lax.dot_general(
        x_ref[...], w_ref[...],
        dimension_numbers=(((1,), (1,)), ((), ())),
        preferred_element_type=jnp.float32,
    )

    @pl.when(k == pl.num_programs(2) - 1)
    def _():
        o_ref[...] = acc_ref[...].astype(o_ref.dtype)


def _lm_head_kernel_bias(x_ref, w_ref, b_ref, o_ref, acc_ref):
    k = pl.program_id(2)

    @pl.when(k == 0)
    def _():
        acc_ref[...] = jnp.zeros_like(acc_ref)

    acc_ref[...] += lax.dot_general(
        x_ref[...], w_ref[...],
        dimension_numbers=(((1,), (1,)), ((), ())),
        preferred_element_type=jnp.float32,
    )

    @pl.when(k == pl.num_programs(2) - 1)
    def _():
        o_ref[...] = (acc_ref[...] + b_ref[...]).astype(o_ref.dtype)


def _lm_head_matmul(x2d, w, b, *, tm, tn, tk, out_dtype, w_buffers):
    """x2d: [Mp, Kp] (compute dtype), w: [Np, Kp] (compute dtype, pre-padded),
    b: [1, Np] f32 or None.  All padded dims are tile multiples."""
    Mp, Kp = x2d.shape
    Np, Kp_w = w.shape
    assert Kp == Kp_w
    grid = (Mp // tm, Np // tn, Kp // tk)

    x_spec = pl.BlockSpec((tm, tk), lambda m, n, k: (m, k))
    if w_buffers == 2:
        w_spec = pl.BlockSpec((tn, tk), lambda m, n, k: (n, k))
    else:
        # Deeper prefetch on the dominant (weight) stream only.
        w_spec = pl.BlockSpec((tn, tk), lambda m, n, k: (n, k),
                              pipeline_mode=pl.Buffered(w_buffers))
    o_spec = pl.BlockSpec((tm, tn), lambda m, n, k: (m, n))

    # VMEM budget: double-buffered x/out, w_buffers-deep weight, f32 acc.
    in_itemsize = jnp.dtype(x2d.dtype).itemsize
    out_itemsize = jnp.dtype(out_dtype).itemsize
    need = (2 * tm * tk * in_itemsize
            + w_buffers * tn * tk * in_itemsize
            + 2 * tm * tn * out_itemsize
            + tm * tn * 4)
    if b is not None:
        need += 2 * tn * 4
    # Headroom for pipeline bookkeeping; cap at 64 MiB so the same config also
    # fits v7x's 64 MiB physical VMEM (v5e/v6e have 128 MiB physical).
    vmem_limit = int(min(max(need + (8 << 20), 32 << 20), 64 << 20))

    cparams = pltpu.CompilerParams(
        dimension_semantics=("parallel", "parallel", "arbitrary"),
        vmem_limit_bytes=vmem_limit,
    )
    out_shape = jax.ShapeDtypeStruct((Mp, Np), out_dtype)
    scratch = [pltpu.VMEM((tm, tn), jnp.float32)]

    if b is None:
        return pl.pallas_call(
            _lm_head_kernel,
            out_shape=out_shape,
            grid_spec=pltpu.PrefetchScalarGridSpec(
                num_scalar_prefetch=0, grid=grid,
                in_specs=[x_spec, w_spec],
                out_specs=o_spec,
                scratch_shapes=scratch),
            compiler_params=cparams,
        )(x2d, w)

    b_spec = pl.BlockSpec((1, tn), lambda m, n, k: (0, n))
    return pl.pallas_call(
        _lm_head_kernel_bias,
        out_shape=out_shape,
        grid_spec=pltpu.PrefetchScalarGridSpec(
            num_scalar_prefetch=0, grid=grid,
            in_specs=[x_spec, w_spec, b_spec],
            out_specs=o_spec,
            scratch_shapes=scratch),
        compiler_params=cparams,
    )(x2d, w, b)


def make_sliced_lm_head(weight, bias, split_num, *,
                        tm=512, tn=512, tk=1024,
                        compute_dtype=jnp.bfloat16, out_dtype=None,
                        w_buffers=2):
    """Prepare (cast + pad) the weight ONCE and return a jitted forward.

    weight: [outC, inC]; bias: [outC] or None.
    Defaults (512, 512, 1024) fit comfortably in VMEM on v5e/v6e/v7x
    (~8 MiB of tiles); on v6e you may grow toward tn=2048, tk=2048.
    """
    outC, inC = weight.shape
    # Kept for semantic parity with the PyTorch module; the split-and-sum over
    # K slices equals a full-K reduction, so split boundaries do not constrain
    # the kernel's K tiling (ragged last split handled for free).
    _split_size = inC // split_num // 2 * 2  # noqa: F841

    tn_ = _pick_tile(outC, tn, 128)
    tk_ = _pick_tile(inC, tk, 128)
    Np = _round_up(_round_up(outC, 128), tn_)
    Kp = _round_up(_round_up(inC, 128), tk_)

    w = weight.astype(compute_dtype)
    if (Np, Kp) != (outC, inC):
        w = jnp.pad(w, ((0, Np - outC), (0, Kp - inC)))
    w = jax.device_put(w)

    if bias is not None:
        b = bias.reshape(1, outC).astype(jnp.float32)
        if Np != outC:
            b = jnp.pad(b, ((0, 0), (0, Np - outC)))
        b = jax.device_put(b)
    else:
        b = None

    @jax.jit
    def forward(hidden_states):
        B, S, inC_x = hidden_states.shape
        assert inC_x == inC
        M = B * S
        odt = hidden_states.dtype if out_dtype is None else out_dtype

        # 16-row alignment: bf16 packs two rows per sublane (min tile (16,128)).
        tm_ = _pick_tile(M, tm, 16)
        Mp = _round_up(_round_up(M, 16), tm_)

        x2d = hidden_states.reshape(M, inC).astype(compute_dtype)
        if (Mp, Kp) != (M, inC):
            x2d = jnp.pad(x2d, ((0, Mp - M), (0, Kp - inC)))

        out2d = _lm_head_matmul(x2d, w, b, tm=tm_, tn=tn_, tk=tk_,
                                out_dtype=odt, w_buffers=w_buffers)
        if (Mp, Np) != (M, outC):
            out2d = out2d[:M, :outC]
        return out2d.reshape(B, S, outC)

    # TODO(synk): the NPU int8/int4 quantized-weight path of LMHeadLinear
    # (scales / asymmetric zero points, weight prefetch runtime) is
    # runtime-specific and not reproduced; this implements the fp math of
    # SlicedLMHead.forward.
    return forward


def sliced_lm_head(hidden_states, weight, bias, split_num, **kwargs):
    """One-shot convenience wrapper. For repeated calls (e.g. a decode loop),
    use make_sliced_lm_head so the weight cast/pad is hoisted out of the step."""
    return make_sliced_lm_head(weight, bias, split_num, **kwargs)(hidden_states)


if __name__ == "__main__":
    # Small shapes consistent with the module's forward.  inC=300 with
    # split_num=2 gives a ragged last split (150 / 150) and a non-128-multiple
    # K, exercising the padded-K path; outC=256 is a clean 128 multiple so the
    # no-pad / no-trailing-slice fast path is used for N.
    B, S, inC, outC, split_num = 2, 8, 300, 256, 2

    key = jax.random.PRNGKey(0)
    k_x, k_w, k_b = jax.random.split(key, 3)
    hidden_states = jax.random.normal(k_x, (B, S, inC), dtype=jnp.float32)
    weight = jax.random.normal(k_w, (outC, inC), dtype=jnp.float32) * 0.02
    bias = jax.random.normal(k_b, (outC,), dtype=jnp.float32) * 0.01

    fwd_bias = make_sliced_lm_head(weight, bias, split_num)
    fwd_nobias = make_sliced_lm_head(weight, None, split_num)

    logits = fwd_bias(hidden_states)
    jax.block_until_ready(logits)
    logits_nb = fwd_nobias(hidden_states)
    jax.block_until_ready(logits_nb)

    # Decode-shaped call (B*S == 1) through the same kernel (M padded to 16).
    hs_decode = hidden_states[:1, :1, :]
    logits_dec = fwd_bias(hs_decode)
    jax.block_until_ready(logits_dec)

    # Reference with the same bf16-operand / f32-accumulation recipe.
    ref_mm = jnp.einsum(
        "bsk,nk->bsn",
        hidden_states.astype(jnp.bfloat16),
        weight.astype(jnp.bfloat16),
        preferred_element_type=jnp.float32,
    )
    ref_bias = ref_mm + bias

    assert logits.shape == (B, S, outC)
    assert logits_nb.shape == (B, S, outC)
    assert logits_dec.shape == (1, 1, outC)
    assert jnp.allclose(logits, ref_bias, atol=1e-2, rtol=1e-2)
    assert jnp.allclose(logits_nb, ref_mm, atol=1e-2, rtol=1e-2)
    assert jnp.allclose(logits_dec, ref_bias[:1, :1], atol=1e-2, rtol=1e-2)

    print("KERNEL_OK")
</pallas_src>

<mosaic_0001>
module attributes {stable_mosaic.version = 11 : i64} {
  func.func @_lm_head_kernel_bias(%arg0: i32, %arg1: i32, %arg2: i32, %arg3: memref<16x384xbf16, #tpu.memory_space<vmem>>, %arg4: memref<256x384xbf16, #tpu.memory_space<vmem>>, %arg5: memref<1x256xf32, #tpu.memory_space<vmem>>, %arg6: memref<16x256xf32, #tpu.memory_space<vmem>>, %arg7: memref<16x256xf32, #tpu.memory_space<vmem>>) attributes {dimension_semantics = [#tpu.dimension_semantics<parallel>, #tpu.dimension_semantics<parallel>, #tpu.dimension_semantics<arbitrary>], iteration_bounds = array<i64: 1, 1, 1>, scalar_prefetch = 0 : i64, scratch_operands = 1 : i64, tpu.core_type = #tpu.core_type<tc>, window_params = [{transform_indices = @transform_0, window_bounds = array<i64: 16, 384>}, {transform_indices = @transform_1, window_bounds = array<i64: 256, 384>}, {transform_indices = @transform_2, window_bounds = array<i64: 1, 256>}, {transform_indices = @transform_3, window_bounds = array<i64: 16, 256>}]} {
    %c0_i32 = arith.constant 0 : i32
    %0 = arith.cmpi eq, %arg2, %c0_i32 : i32
    %1 = arith.extui %0 : i1 to i32
    %c0_i32_0 = arith.constant 0 : i32
    %2 = arith.cmpi ne, %1, %c0_i32_0 : i32
    scf.if %2 {
      %cst_10 = arith.constant 0.000000e+00 : f32
      %12 = vector.broadcast %cst_10 : f32 to vector<16x256xf32>
      %c0_11 = arith.constant 0 : index
      %c0_12 = arith.constant 0 : index
      %13 = vector.load %arg7[%c0_11, %c0_12] : memref<16x256xf32, #tpu.memory_space<vmem>>, vector<16x256xf32>
      tpu.vector_store %arg7[%c0_11, %c0_12], %12 {strides = array<i32>} : memref<16x256xf32, #tpu.memory_space<vmem>>, vector<16x256xf32>,
    } else {
    }
    %c0 = arith.constant 0 : index
    %c0_1 = arith.constant 0 : index
    %3 = vector.load %arg7[%c0, %c0_1] : memref<16x256xf32, #tpu.memory_space<vmem>>, vector<16x256xf32>
    %c0_2 = arith.constant 0 : index
    %c0_3 = arith.constant 0 : index
    %4 = vector.load %arg3[%c0_2, %c0_3] : memref<16x384xbf16, #tpu.memory_space<vmem>>, vector<16x384xbf16>
    %c0_4 = arith.constant 0 : index
    %c0_5 = arith.constant 0 : index
    %5 = vector.load %arg4[%c0_4, %c0_5] : memref<256x384xbf16, #tpu.memory_space<vmem>>, vector<256x384xbf16>
    %cst = arith.constant dense<0.000000e+00> : vector<16x256xf32>
    %6 = tpu.matmul %4, %5, %cst {dimension_numbers = #tpu.dot_dimension_numbers<[1], [1], [0], [0], [0, 0, 1, 0], [], []>} : vector<16x384xbf16>, vector<256x384xbf16>, vector<16x256xf32> -> vector<16x256xf32>
    %7 = arith.addf %3, %6 : vector<16x256xf32>
    %c0_6 = arith.constant 0 : index
    %c0_7 = arith.constant 0 : index
    %8 = vector.load %arg7[%c0_6, %c0_7] : memref<16x256xf32, #tpu.memory_space<vmem>>, vector<16x256xf32>
    tpu.vector_store %arg7[%c0_6, %c0_7], %7 {strides = array<i32>} : memref<16x256xf32, #tpu.memory_space<vmem>>, vector<16x256xf32>,
    %c0_i32_8 = arith.constant 0 : i32
    %9 = arith.cmpi eq, %arg2, %c0_i32_8 : i32
    %10 = arith.extui %9 : i1 to i32
    %c0_i32_9 = arith.constant 0 : i32
    %11 = arith.cmpi ne, %10, %c0_i32_9 : i32
    scf.if %11 {
      %c0_10 = arith.constant 0 : index
      %c0_11 = arith.constant 0 : index
      %12 = vector.load %arg7[%c0_10, %c0_11] : memref<16x256xf32, #tpu.memory_space<vmem>>, vector<16x256xf32>
      %c0_12 = arith.constant 0 : index
      %c0_13 = arith.constant 0 : index
      %13 = vector.load %arg5[%c0_12, %c0_13] : memref<1x256xf32, #tpu.memory_space<vmem>>, vector<1x256xf32>
      %14 = vector.broadcast %13 : vector<1x256xf32> to vector<16x256xf32>
      %15 = arith.addf %12, %14 : vector<16x256xf32>
      %c0_14 = arith.constant 0 : index
      %c0_15 = arith.constant 0 : index
      %16 = vector.load %arg6[%c0_14, %c0_15] : memref<16x256xf32, #tpu.memory_space<vmem>>, vector<16x256xf32>
      tpu.vector_store %arg6[%c0_14, %c0_15], %15 {strides = array<i32>} : memref<16x256xf32, #tpu.memory_space<vmem>>, vector<16x256xf32>,
    } else {
    }
    return
  }
  func.func @transform_0(%arg0: i32, %arg1: i32, %arg2: i32) -> (i32, i32) {
    %c0_i32 = arith.constant 0 : i32
    return %arg0, %arg2 : i32, i32
  }
  func.func @transform_1(%arg0: i32, %arg1: i32, %arg2: i32) -> (i32, i32) {
    %c0_i32 = arith.constant 0 : i32
    return %arg1, %arg2 : i32, i32
  }
  func.func @transform_2(%arg0: i32, %arg1: i32, %arg2: i32) -> (i32, i32) {
    %c0_i32 = arith.constant 0 : i32
    %c0_i32_0 = arith.constant 0 : i32
    return %c0_i32, %arg1 : i32, i32
  }
  func.func @transform_3(%arg0: i32, %arg1: i32, %arg2: i32) -> (i32, i32) {
    %c0_i32 = arith.constant 0 : i32
    return %arg0, %arg1 : i32, i32
  }
}

</mosaic_0001>

<bundles_post_ra>
// kernel: forward.1
= control target key start
LH: loop header
LB: loop body
LE: loop exit
PB: predicated region body
PF: predicated region fallthrough
CT: control target
= control target key end

     0   :  { %8 = vsyncpa [#allocation4], 0  ;;  %s885_s0 = inlined_call_operand.vmem [shape: bf16[16,384], index: 0, kind: input, shape index: {}]   ;;  %s886_s1 = inlined_call_operand.hbm [shape: bf16[256,384], index: 1, kind: input, shape index: {}]   ;;  %s887_s2 = inlined_call_operand.vmem [shape: f32[1,256], index: 2, kind: input, shape index: {}]   ;;  %s888_s3 = inlined_call_operand.hbm [shape: f32[16,256], index: 3, kind: output, shape index: {}]  }
   0x1   :  { %9 = vsyncpa [#allocation5], 0  ;;  %s16_s14 = sshll.u32 %s886_s1, 4  ;;  %s828_s15 = smov [#allocation3]   ;;  %s17_s14 = int_to_ptr.hbm [resolvable:$true] %s16_s14 }
   0x2   :  { %s18_s16 = sshll.u32 %s828_s15, 4  ;;  %s829_s17 = smov 192   ;;  %s19_s16 = int_to_ptr.vmem [resolvable:$true] %s18_s16 }
   0x3   :  { %s830_s18 = smov 12  }
   0x4   :  { %24 = dma.hbm_to_vmem [thread:$0]  %s17_s14, 6144, %s19_s16, [#allocation4], %s829_s17, %s829_s17, %s830_s18  }
   0x5   :  { %824 = dma.done.wait [#allocation4], 6144  }
   0x6   :  { %825 = vsyncadd [#allocation4], 4294961152  ;;  %v613_v0 = vld [vmem:[#allocation3 + $0xa8] sm:$0xf]  ;;  %v744_v1 = vld [vmem:[#allocation3 + $0xb0] sm:$0xf0] }
   0x7   :  { %v743_v2 = vld [vmem:[#allocation3 + $0xac] sm:$0xf]  ;;  %v614_v3 = vor.u32 %v744_v1, %v613_v0  ;;  %v615_v4 = vld [vmem:[#allocation3 + $0xb4] sm:$0xf0]  ;;  %v601_v6 = vld [vmem:[#allocation3 + $0x90] sm:$0xf] }
   0x8   :  { %v618_v5 = vor.u32 %v743_v2, %v615_v4  ;;  %v741_v7 = vld [vmem:[#allocation3 + $0x98] sm:$0xf0]  ;;  %v740_v8 = vld [vmem:[#allocation3 + $0x94] sm:$0xf]  ;;  %v603_v9 = vld [vmem:[#allocation3 + $0x9c] sm:$0xf0] }
   0x9   :  { %383 = vmatpush.bf16.xpose.msra.mxu0 %v614_v3  ;;  %v621_v10 = vld [vmem:[#allocation3 + $0xb0] sm:$0xf]  ;;  %v745_v11 = vld [vmem:[#allocation3 + $0xb8] sm:$0xf0]  ;;  %v602_v13 = vor.u32 %v741_v7, %v601_v6  ;;  %v606_v14 = vor.u32 %v740_v8, %v603_v9  ;;  %v609_v15 = vld [vmem:[#allocation3 + $0x98] sm:$0xf] }
   0xa   :  { %397 = vmatpush.bf16.xpose.msra.mxu1 %v618_v5  ;;  %v622_v12 = vor.u32 %v745_v11, %v621_v10  ;;  %v742_v16 = vld [vmem:[#allocation3 + $0xa0] sm:$0xf0]  ;;  %v589_v17 = vld [vmem:[#allocation3 + $0x78] sm:$0xf]  ;;  %v709_v20 = vld [vmem:[#allocation3 + $0x168] sm:$0xf] }
   0xb   :  { %v738_v18 = vld [vmem:[#allocation3 + $0x80] sm:$0xf0]  ;;  %v610_v19 = vor.u32 %v742_v16, %v609_v15  ;;  %v768_v21 = vld [vmem:[#allocation3 + $0x170] sm:$0xf0]  ;;  %v737_v22 = vld [vmem:[#allocation3 + $0x7c] sm:$0xf] }
   0xc   :  { %411 = vmatpush.bf16.xpose.msra.mxu2 %v622_v12  ;;  %v591_v23 = vld [vmem:[#allocation3 + $0x84] sm:$0xf0]  ;;  %v710_v24 = vor.u32 %v768_v21, %v709_v20  ;;  %v590_v25 = vor.u32 %v738_v18, %v589_v17  ;;  %v597_v27 = vld [vmem:[#allocation3 + $0x80] sm:$0xf]  ;;  %v739_v28 = vld [vmem:[#allocation3 + $0x88] sm:$0xf0] }
   0xd   :  { %v594_v26 = vor.u32 %v737_v22, %v591_v23  ;;  %v577_v29 = vld [vmem:[#allocation3 + $0x60] sm:$0xf]  ;;  %v735_v30 = vld [vmem:[#allocation3 + $0x68] sm:$0xf0]  ;;  %v598_v31 = vor.u32 %v739_v28, %v597_v27  ;;  %v697_v32 = vld [vmem:[#allocation3 + $0x150] sm:$0xf] }
   0xe   :  { %425 = vmatpush.bf16.xpose.msra.mxu3 %v710_v24  ;;  %v765_v33 = vld [vmem:[#allocation3 + $0x158] sm:$0xf0]  ;;  %v734_v34 = vld [vmem:[#allocation3 + $0x64] sm:$0xf]  ;;  %v579_v35 = vld [vmem:[#allocation3 + $0x6c] sm:$0xf0]  ;;  %v578_v37 = vor.u32 %v735_v30, %v577_v29 }
   0xf   :  { %v698_v36 = vor.u32 %v765_v33, %v697_v32  ;;  %v582_v38 = vor.u32 %v734_v34, %v579_v35  ;;  %v585_v39 = vld [vmem:[#allocation3 + $0x68] sm:$0xf]  ;;  %v736_v40 = vld [vmem:[#allocation3 + $0x70] sm:$0xf0]  ;;  %v685_v44 = vld [vmem:[#allocation3 + $0x138] sm:$0xf] }
  0x10   :  { %v565_v41 = vld [vmem:[#allocation3 + $0x48] sm:$0xf]  ;;  %v732_v42 = vld [vmem:[#allocation3 + $0x50] sm:$0xf0]  ;;  %v586_v43 = vor.u32 %v736_v40, %v585_v39  ;;  %v762_v45 = vld [vmem:[#allocation3 + $0x140] sm:$0xf0] }
  0x11   :  { %384 = vmatpush.bf16.xpose.msra.mxu0 %v602_v13  ;;  %v731_v46 = vld [vmem:[#allocation3 + $0x4c] sm:$0xf]  ;;  %v567_v47 = vld [vmem:[#allocation3 + $0x54] sm:$0xf0]  ;;  %v686_v48 = vor.u32 %v762_v45, %v685_v44  ;;  %v566_v49 = vor.u32 %v732_v42, %v565_v41  ;;  %v573_v51 = vld [vmem:[#allocation3 + $0x50] sm:$0xf] }
  0x12   :  { %398 = vmatpush.bf16.xpose.msra.mxu1 %v606_v14  ;;  %v570_v50 = vor.u32 %v731_v46, %v567_v47  ;;  %v733_v52 = vld [vmem:[#allocation3 + $0x58] sm:$0xf0]  ;;  %v553_v53 = vld [vmem:[#allocation3 + $0x30] sm:$0xf]  ;;  %v673_v56 = vld [vmem:[#allocation3 + $0x120] sm:$0xf] }
  0x13   :  { %v729_v54 = vld [vmem:[#allocation3 + $0x38] sm:$0xf0]  ;;  %v574_v55 = vor.u32 %v733_v52, %v573_v51  ;;  %v759_v57 = vld [vmem:[#allocation3 + $0x128] sm:$0xf0]  ;;  %v728_v58 = vld [vmem:[#allocation3 + $0x34] sm:$0xf] }
  0x14   :  { %412 = vmatpush.bf16.xpose.msra.mxu2 %v610_v19  ;;  %v555_v59 = vld [vmem:[#allocation3 + $0x3c] sm:$0xf0]  ;;  %v674_v60 = vor.u32 %v759_v57, %v673_v56  ;;  %v554_v61 = vor.u32 %v729_v54, %v553_v53  ;;  %v561_v63 = vld [vmem:[#allocation3 + $0x38] sm:$0xf]  ;;  %v730_v0 = vld [vmem:[#allocation3 + $0x40] sm:$0xf0] }
  0x15   :  { %v558_v62 = vor.u32 %v728_v58, %v555_v59  ;;  %v541_v1 = vld [vmem:[#allocation3 + $0x18] sm:$0xf]  ;;  %v726_v2 = vld [vmem:[#allocation3 + $0x20] sm:$0xf0]  ;;  %v562_v3 = vor.u32 %v730_v0, %v561_v63  ;;  %v661_v4 = vld [vmem:[#allocation3 + $0x108] sm:$0xf] }
  0x16   :  { %426 = vmatpush.bf16.xpose.msra.mxu3 %v698_v36  ;;  %v756_v5 = vld [vmem:[#allocation3 + $0x110] sm:$0xf0]  ;;  %v725_v6 = vld [vmem:[#allocation3 + $0x1c] sm:$0xf]  ;;  %v543_v7 = vld [vmem:[#allocation3 + $0x24] sm:$0xf0]  ;;  %v542_v9 = vor.u32 %v726_v2, %v541_v1 }
  0x17   :  { %v662_v8 = vor.u32 %v756_v5, %v661_v4  ;;  %v546_v10 = vor.u32 %v725_v6, %v543_v7  ;;  %v549_v11 = vld [vmem:[#allocation3 + $0x20] sm:$0xf]  ;;  %v727_v12 = vld [vmem:[#allocation3 + $0x28] sm:$0xf0]  ;;  %v722_v15 = vld [vmem:[#allocation3 + $0x4] sm:$0xf] }
  0x18   :  { %v529_v13 = vld [vmem:[#allocation3] sm:$0xf]  ;;  %v723_v14 = vld [vmem:[#allocation3 + $0x8] sm:$0xf0]  ;;  %v550_v16 = vor.u32 %v727_v12, %v549_v11  ;;  %v649_v17 = vld [vmem:[#allocation3 + $0xf0] sm:$0xf] }
  0x19   :  { %385 = vmatpush.bf16.xpose.msra.mxu0 %v590_v25  ;;  %v753_v18 = vld [vmem:[#allocation3 + $0xf8] sm:$0xf0]  ;;  %v531_v19 = vld [vmem:[#allocation3 + $0xc] sm:$0xf0]  ;;  %v767_v20 = vld [vmem:[#allocation3 + $0x16c] sm:$0xf]  ;;  %v530_v25 = vor.u32 %v723_v14, %v529_v13 }
  0x1a   :  { %399 = vmatpush.bf16.xpose.msra.mxu1 %v594_v26  ;;  %v711_v21 = vld [vmem:[#allocation3 + $0x174] sm:$0xf0]  ;;  %v650_v22 = vor.u32 %v753_v18, %v649_v17  ;;  %v717_v23 = vld [vmem:[#allocation3 + $0x170] sm:$0xf]  ;;  %v769_v24 = vld [vmem:[#allocation3 + $0x178] sm:$0xf0]  ;;  %v534_v26 = vor.u32 %v722_v15, %v531_v19 }
  0x1b   :  { %v714_v27 = vor.u32 %v767_v20, %v711_v21  ;;  %v718_v28 = vor.u32 %v769_v24, %v717_v23  ;;  %v537_v29 = vld [vmem:[#allocation3 + $0x8] sm:$0xf]  ;;  %v724_v30 = vld [vmem:[#allocation3 + $0x10] sm:$0xf0]  ;;  %v699_v32 = vld [vmem:[#allocation3 + $0x15c] sm:$0xf0] }
  0x1c   :  { %413 = vmatpush.bf16.xpose.msra.mxu2 %v598_v31  ;;  %v764_v31 = vld [vmem:[#allocation3 + $0x154] sm:$0xf]  ;;  %v538_v33 = vor.u32 %v724_v30, %v537_v29  ;;  %v637_v34 = vld [vmem:[#allocation3 + $0xd8] sm:$0xf]  ;;  %v750_v35 = vld [vmem:[#allocation3 + $0xe0] sm:$0xf0] }
  0x1d   :  { %v705_v36 = vld [vmem:[#allocation3 + $0x158] sm:$0xf]  ;;  %v517_v39 = vld [vmem:[%s885_s0] sm:$0xf]  ;;  %v720_v40 = vld [vmem:[%s885_s0 + $0x8] sm:$0xf0]  ;;  %v702_v45 = vor.u32 %v764_v31, %v699_v32 }
  0x1e   :  { %427 = vmatpush.bf16.xpose.msra.mxu3 %v686_v48  ;;  %v719_v41 = vld [vmem:[%s885_s0 + $0x4] sm:$0xf]  ;;  %v519_v42 = vld [vmem:[%s885_s0 + $0xc] sm:$0xf0]  ;;  %v525_v46 = vld [vmem:[%s885_s0 + $0x8] sm:$0xf] }
  0x1f   :  { %v869_v44 = vor.u32 %v719_v41, %v519_v42  ;;  %v721_v47 = vld [vmem:[%s885_s0 + $0x10] sm:$0xf0]  ;;  %v747_v51 = vld [vmem:[#allocation3 + $0xc8] sm:$0xf0]  ;;  %v761_v52 = vld [vmem:[#allocation3 + $0x13c] sm:$0xf] }
  0x20   :  { %v687_v53 = vld [vmem:[#allocation3 + $0x144] sm:$0xf0]  ;;  %v763_v56 = vld [vmem:[#allocation3 + $0x148] sm:$0xf0]  ;;  %v758_v59 = vld [vmem:[#allocation3 + $0x124] sm:$0xf] }
  0x21   :  { %386 = vmatpush.bf16.xpose.msra.mxu0 %v578_v37  ;;  %v766_v37 = vld [vmem:[#allocation3 + $0x160] sm:$0xf0]  ;;  %v690_v57 = vor.u32 %v761_v52, %v687_v53  ;;  %v755_v1 = vld [vmem:[#allocation3 + $0x10c] sm:$0xf]  ;;  %v663_v2 = vld [vmem:[#allocation3 + $0x114] sm:$0xf0] }
  0x22   :  { %400 = vmatpush.bf16.xpose.msra.mxu1 %v582_v38  ;;  %v638_v38 = vor.u32 %v750_v35, %v637_v34  ;;  %v706_v48 = vor.u32 %v766_v37, %v705_v36  ;;  %v757_v4 = vld [vmem:[#allocation3 + $0x118] sm:$0xf0]  ;;  %v666_v5 = vor.u32 %v755_v1, %v663_v2  ;;  %v752_v7 = vld [vmem:[#allocation3 + $0xf4] sm:$0xf]  ;;  %v639_v14 = vld [vmem:[#allocation3 + $0xe4] sm:$0xf0] }
  0x23   :  { %v749_v13 = vld [vmem:[#allocation3 + $0xdc] sm:$0xf]  ;;  %v645_v15 = vld [vmem:[#allocation3 + $0xe0] sm:$0xf]  ;;  %v746_v19 = vld [vmem:[#allocation3 + $0xc4] sm:$0xf] }
  0x24   :  { %414 = vmatpush.bf16.xpose.msra.mxu2 %v586_v43  ;;  %v518_v43 = vor.u32 %v720_v40, %v517_v39  ;;  %v642_v17 = vor.u32 %v749_v13, %v639_v14  ;;  %v627_v20 = vld [vmem:[#allocation3 + $0xcc] sm:$0xf0]  ;;  %v633_v21 = vld [vmem:[#allocation3 + $0xc8] sm:$0xf]  ;;  %s502_s7 = sshll.u32 %s888_s3, 4  ;;  %s832_s8 = smov 256   ;;  %s503_s7 = int_to_ptr.hbm [resolvable:$true] %s502_s7 }
  0x25   :  { %v630_v23 = vor.u32 %v746_v19, %v627_v20  ;;  %s833_s9 = smov 16  }
  0x26   :  { %428 = vmatpush.bf16.xpose.msra.mxu3 %v674_v60  ;;  %v675_v60 = vld [vmem:[#allocation3 + $0x12c] sm:$0xf0] }
  0x27   :  { %v678_v63 = vor.u32 %v758_v59, %v675_v60 }
  0x29   :  { %387 = vmatpush.bf16.xpose.msra.mxu0 %v566_v49  ;;  %v526_v49 = vor.u32 %v721_v47, %v525_v46 }
  0x2a   :  { %401 = vmatpush.bf16.xpose.msra.mxu1 %v570_v50  ;;  %v625_v50 = vld [vmem:[#allocation3 + $0xc0] sm:$0xf] }
  0x2b   :  { %v626_v54 = vor.u32 %v747_v51, %v625_v50 }
  0x2c   :  { %415 = vmatpush.bf16.xpose.msra.mxu2 %v574_v55  ;;  %v693_v55 = vld [vmem:[#allocation3 + $0x140] sm:$0xf] }
  0x2d   :  { %v694_v58 = vor.u32 %v763_v56, %v693_v55 }
  0x2e   :  { %429 = vmatpush.bf16.xpose.msra.mxu3 %v662_v8  ;;  %v651_v8 = vld [vmem:[#allocation3 + $0xfc] sm:$0xf0] }
  0x2f   :  { %v654_v11 = vor.u32 %v752_v7, %v651_v8 }
  0x31   :  { %388 = vmatpush.bf16.xpose.msra.mxu0 %v554_v61  ;;  %v681_v61 = vld [vmem:[#allocation3 + $0x128] sm:$0xf] }
  0x32   :  { %402 = vmatpush.bf16.xpose.msra.mxu1 %v558_v62  ;;  %v760_v62 = vld [vmem:[#allocation3 + $0x130] sm:$0xf0] }
  0x33   :  { %v682_v0 = vor.u32 %v760_v62, %v681_v61 }
  0x34   :  { %416 = vmatpush.bf16.xpose.msra.mxu2 %v562_v3  ;;  %v669_v3 = vld [vmem:[#allocation3 + $0x110] sm:$0xf] }
  0x35   :  { %v670_v6 = vor.u32 %v757_v4, %v669_v3 }
  0x36   :  { %430 = vmatpush.bf16.xpose.msra.mxu3 %v650_v22  ;;  %v748_v22 = vld [vmem:[#allocation3 + $0xd0] sm:$0xf0] }
  0x37   :  { %v634_v24 = vor.u32 %v748_v22, %v633_v21 }
  0x39   :  { %389 = vmatpush.bf16.xpose.msra.mxu0 %v542_v9  ;;  %v657_v9 = vld [vmem:[#allocation3 + $0xf8] sm:$0xf] }
  0x3a   :  { %403 = vmatpush.bf16.xpose.msra.mxu1 %v546_v10  ;;  %v754_v10 = vld [vmem:[#allocation3 + $0x100] sm:$0xf0] }
  0x3b   :  { %v658_v12 = vor.u32 %v754_v10, %v657_v9 }
  0x3c   :  { %417 = vmatpush.bf16.xpose.msra.mxu2 %v550_v16  ;;  %v751_v16 = vld [vmem:[#allocation3 + $0xe8] sm:$0xf0] }
  0x3d   :  { %v646_v18 = vor.u32 %v751_v16, %v645_v15 }
  0x3e   :  { %431 = vmatpush.bf16.xpose.msra.mxu3 %v638_v38 }
  0x41   :  { %390 = vmatpush.bf16.xpose.msra.mxu0 %v530_v25 }
  0x42   :  { %404 = vmatpush.bf16.xpose.msra.mxu1 %v534_v26 }
  0x44   :  { %418 = vmatpush.bf16.xpose.msra.mxu2 %v538_v33 }
  0x46   :  { %432 = vmatpush.bf16.xpose.msra.mxu3 %v626_v54 }
  0x48   :  { %391 = vmatmul.bf16.vlgmr.msra.gmra.mxu0 %v518_v43 }
  0x49   :  { %439 = vmatpush.bf16.xpose.msrb.mxu0 %v714_v27  ;;  %405 = vmatmul.bf16.vlgmr.msra.gmra.mxu1 %v869_v44  ;;  %v482_v27 = vld [vmem:[%s887_s2] sm:$0x3]  ;;  %s831_s2 = smov [#allocation6]  }
  0x4a   :  { %453 = vmatpush.bf16.xpose.msrb.mxu1 %v718_v28  ;;  %v484_v29 = vperm.slane %v482_v27, 0  ;;  %s500_s4 = sshll.u32 %s831_s2, 4  ;;  %s501_s4 = int_to_ptr.vmem [resolvable:$true] %s500_s4 }
  0x4b   :  { %419 = vmatmul.bf16.vlgmr.msra.gmra.mxu2 %v526_v49 }
  0x4d   :  { %433 = vmatmul.bf16.vlgmr.msra.gmra.mxu3 %v518_v43  ;;  %v485_v43 = vperm.slane %v482_v27, 1 }
  0x51   :  { %440 = vmatpush.bf16.xpose.msrb.mxu0 %v702_v45 }
  0x52   :  { %454 = vmatpush.bf16.xpose.msrb.mxu1 %v706_v48 }
  0x59   :  { %441 = vmatpush.bf16.xpose.msrb.mxu0 %v690_v57 }
  0x5a   :  { %455 = vmatpush.bf16.xpose.msrb.mxu1 %v694_v58 }
  0x61   :  { %442 = vmatpush.bf16.xpose.msrb.mxu0 %v678_v63 }
  0x62   :  { %456 = vmatpush.bf16.xpose.msrb.mxu1 %v682_v0 }
  0x69   :  { %443 = vmatpush.bf16.xpose.msrb.mxu0 %v666_v5 }
  0x6a   :  { %457 = vmatpush.bf16.xpose.msrb.mxu1 %v670_v6 }
  0x71   :  { %444 = vmatpush.bf16.xpose.msrb.mxu0 %v654_v11 }
  0x72   :  { %458 = vmatpush.bf16.xpose.msrb.mxu1 %v658_v12 }
  0x79   :  { %445 = vmatpush.bf16.xpose.msrb.mxu0 %v642_v17 }
  0x7a   :  { %459 = vmatpush.bf16.xpose.msrb.mxu1 %v646_v18 }
  0x81   :  { %446 = vmatpush.bf16.xpose.msrb.mxu0 %v630_v23 }
  0x82   :  { %460 = vmatpush.bf16.xpose.msrb.mxu1 %v634_v24 }
  0x88   :  { %447 = vmatmul.bf16.vlgmr.msrb.gmra.mxu0 %v869_v44 }
  0x89   :  { %461 = vmatmul.bf16.vlgmr.msrb.gmra.mxu1 %v526_v49 }
  0xc5   :  { %v392_v25 = vpop.f32.mrf.mxu0 }
  0xc6   :  { %v406_v26 = vpop.f32.mrf.mxu1 }
  0xc7   :  { %v407_v28 = vadd.f32 %v406_v26, %v392_v25 }
  0xcd   :  { %v394_v32 = vpop.f32.mrf.mxu0 }
  0xce   :  { %v420_v30 = vpop.f32.mrf.mxu2  ;;  %v408_v33 = vpop.f32.mrf.mxu1 }
  0xcf   :  { %v421_v31 = vadd.f32 %v420_v30, %v407_v28  ;;  %v409_v35 = vadd.f32 %v408_v33, %v394_v32 }
  0xd0   :  { %v434_v39 = vpop.f32.mrf.mxu3 }
  0xd1   :  { %v488_v34 = vadd.f32 %v484_v29, %v421_v31 }
  0xd3   :  { %492 = vst [vmem:[#allocation6] sm:$0xff] %v488_v34 }
  0xd6   :  { %v422_v36 = vpop.f32.mrf.mxu2 }
  0xd7   :  { %v423_v37 = vadd.f32 %v422_v36, %v409_v35 }
  0xd8   :  { %v436_v46 = vpop.f32.mrf.mxu3 }
  0xd9   :  { %v490_v38 = vadd.f32 %v484_v29, %v423_v37 }
  0xdb   :  { %494 = vst [vmem:[#allocation6 + $0x10] sm:$0xff] %v490_v38 }
 0x105   :  { %v448_v40 = vpop.f32.mrf.mxu0 }
 0x106   :  { %v449_v41 = vadd.f32 %v448_v40, %v434_v39  ;;  %v462_v42 = vpop.f32.mrf.mxu1 }
 0x108   :  { %v463_v44 = vadd.f32 %v462_v42, %v449_v41 }
 0x10a   :  { %v489_v45 = vadd.f32 %v485_v43, %v463_v44 }
 0x10c   :  { %493 = vst [vmem:[#allocation6 + $0x8] sm:$0xff] %v489_v45 }
 0x10d   :  { %v450_v47 = vpop.f32.mrf.mxu0 }
 0x10e   :  { %v451_v48 = vadd.f32 %v450_v47, %v436_v46  ;;  %v464_v49 = vpop.f32.mrf.mxu1 }
 0x110   :  { %v465_v50 = vadd.f32 %v464_v49, %v451_v48 }
 0x112   :  { %v491_v51 = vadd.f32 %v485_v43, %v465_v50 }
 0x114   :  { %495 = vst [vmem:[#allocation6 + $0x18] sm:$0xff] %v491_v51 }
 0x115   :  { %508 = dma.vmem_to_hbm [thread:$0]  %s501_s4, 512, %s503_s7, [#allocation5], %s832_s8, %s832_s8, %s833_s9  }
 0x116   :  { %826 = dma.done.wait [#allocation5], 512  }
 0x117   :  { %827 = vsyncadd [#allocation5], 4294966784 }
 0x118   :  { %513 = vsyncpa [#allocation4], 1 }
 0x119   :  { %514 = vsyncpa [#allocation5], 1 }

</bundles_post_ra>
